<compile_context>
chip_gen: v5e
topology: v5e:2x2
jax: 0.10.0
libtpu: 0.0.40
codegen_flags: <defaults>
</compile_context>

<pallas_src>
import jax
import jax.numpy as jnp
from jax.experimental import pallas as pl
from jax.experimental.pallas import tpu as pltpu


def _cdiv(a, b):
    return (a + b - 1) // b


def _round_up(v, m):
    return ((v + m - 1) // m) * m


def categorical_logits_kernel(x_ref, w_ref, b_ref, out_ref):
    # logits = x @ W + b   (Linear hot path on the MXU, f32 accumulation)
    x = x_ref[...]                      # (tb, num_inputs)
    w = w_ref[...]                      # (num_inputs, num_outputs) -- VMEM-resident
    b = b_ref[...]                      # (1, num_outputs)          -- VMEM-resident
    logits = jnp.dot(x, w, preferred_element_type=jnp.float32) + b
    out_ref[...] = logits.astype(out_ref.dtype)


def categorical_logits(x, w, b, *, block_b=1024, min_pallas_batch=256):
    """x: (B, num_inputs) f32; w: (num_inputs, num_outputs); b: (num_outputs,).

    Returns the (B, num_outputs) logits parameterizing Categorical(logits=...)."""
    batch, num_inputs = x.shape
    num_outputs = w.shape[1]
    bias = b.reshape(1, num_outputs)

    # Tiny-batch deployment shape (e.g. B=8): a fused XLA GEMV beats any
    # pallas_call; keep the kernel for vectorized-env rollout batches.
    if batch < min_pallas_batch:
        return (x @ w + bias).astype(jnp.float32)

    # Even batch split; ragged last tile is masked by Pallas boundary handling
    # (no jnp.pad / extra HBM copy of x, pad waste < 8 rows per tile).
    nt = _cdiv(batch, block_b)
    if batch >= 512:
        nt = max(nt, 2)   # keep both v7x TensorCores busy on the "parallel" axis
    tb = _round_up(_cdiv(batch, nt), 8)
    nt = _cdiv(batch, tb)

    cost = pl.CostEstimate(
        flops=2 * batch * num_inputs * num_outputs,
        bytes_accessed=4 * (batch * num_inputs + num_inputs * num_outputs
                            + num_outputs + batch * num_outputs),
        transcendentals=0,
    )

    return pl.pallas_call(
        categorical_logits_kernel,
        out_shape=jax.ShapeDtypeStruct((batch, num_outputs), jnp.float32),
        grid=(nt,),
        in_specs=[
            pl.BlockSpec((tb, num_inputs), lambda i: (i, 0)),            # x tile per step
            pl.BlockSpec((num_inputs, num_outputs), lambda i: (0, 0)),   # W resident
            pl.BlockSpec((1, num_outputs), lambda i: (0, 0)),            # bias resident
        ],
        out_specs=pl.BlockSpec((tb, num_outputs), lambda i: (i, 0)),
        compiler_params=pltpu.CompilerParams(
            dimension_semantics=("parallel",)),
        cost_estimate=cost,
    )(x, w, bias)


def init_params(key, num_inputs, num_outputs):
    """Deterministic init matching nn.Linear's U(-1/sqrt(in), 1/sqrt(in))."""
    kw, kb = jax.random.split(key)
    bound = 1.0 / jnp.sqrt(jnp.float32(num_inputs))
    # Stored pre-transposed: (num_inputs, num_outputs)
    w = jax.random.uniform(kw, (num_inputs, num_outputs), jnp.float32,
                           minval=-bound, maxval=bound)
    b = jax.random.uniform(kb, (num_outputs,), jnp.float32,
                           minval=-bound, maxval=bound)
    return w, b


if __name__ == "__main__":
    key = jax.random.PRNGKey(0)
    kx, kp, kx2 = jax.random.split(key, 3)

    # Literal module shapes from Object_Goal_Navigation's Categorical head.
    batch, num_inputs, num_outputs = 8, 32, 8
    x = jax.random.normal(kx, (batch, num_inputs), jnp.float32)
    w, b = init_params(kp, num_inputs, num_outputs)

    # Force the Pallas path (the default threshold would send this tiny batch
    # down the fused-XLA fallback).
    logits = categorical_logits(x, w, b, min_pallas_batch=0)
    jax.block_until_ready(logits)
    ref = x @ w + b[None, :]
    assert logits.shape == (batch, num_outputs)
    assert jnp.allclose(logits, ref, atol=1e-4, rtol=1e-4)

    # Multi-tile + ragged-tail path (batch not a multiple of the tile).
    batch2 = 260
    x2 = jax.random.normal(kx2, (batch2, num_inputs), jnp.float32)
    logits2 = categorical_logits(x2, w, b, block_b=128, min_pallas_batch=0)
    jax.block_until_ready(logits2)
    ref2 = x2 @ w + b[None, :]
    assert logits2.shape == (batch2, num_outputs)
    assert jnp.allclose(logits2, ref2, atol=1e-4, rtol=1e-4)

    # TODO(synk): the torch module returns a Categorical distribution object;
    # the kernel emits its logits parameter (log-probs = log_softmax(logits)).
    print("KERNEL_OK")
</pallas_src>

<mosaic_0001>
module attributes {stable_mosaic.version = 11 : i64} {
  func.func @categorical_logits_kernel(%arg0: i32, %arg1: memref<8x32xf32, #tpu.memory_space<vmem>>, %arg2: memref<32x8xf32, #tpu.memory_space<vmem>>, %arg3: memref<1x8xf32, #tpu.memory_space<vmem>>, %arg4: memref<8x8xf32, #tpu.memory_space<vmem>>) attributes {dimension_semantics = [#tpu.dimension_semantics<parallel>], iteration_bounds = array<i64: 1>, scalar_prefetch = 0 : i64, scratch_operands = 0 : i64, tpu.core_type = #tpu.core_type<tc>, window_params = [{transform_indices = @transform_0, window_bounds = array<i64: 8, 32>}, {pipeline_mode = #tpu.pipeline_mode<synchronous>, transform_indices = @transform_1, window_bounds = array<i64: 32, 8>}, {pipeline_mode = #tpu.pipeline_mode<synchronous>, transform_indices = @transform_2, window_bounds = array<i64: 1, 8>}, {transform_indices = @transform_3, window_bounds = array<i64: 8, 8>}]} {
    %c0 = arith.constant 0 : index
    %c0_0 = arith.constant 0 : index
    %0 = vector.load %arg1[%c0, %c0_0] : memref<8x32xf32, #tpu.memory_space<vmem>>, vector<8x32xf32>
    %c0_1 = arith.constant 0 : index
    %c0_2 = arith.constant 0 : index
    %1 = vector.load %arg2[%c0_1, %c0_2] : memref<32x8xf32, #tpu.memory_space<vmem>>, vector<32x8xf32>
    %c0_3 = arith.constant 0 : index
    %c0_4 = arith.constant 0 : index
    %2 = vector.load %arg3[%c0_3, %c0_4] : memref<1x8xf32, #tpu.memory_space<vmem>>, vector<1x8xf32>
    %cst = arith.constant dense<0.000000e+00> : vector<8x8xf32>
    %3 = tpu.matmul %0, %1, %cst {dimension_numbers = #tpu.dot_dimension_numbers<[1], [0], [0], [1], [0, 0, 1, 1], [], []>} : vector<8x32xf32>, vector<32x8xf32>, vector<8x8xf32> -> vector<8x8xf32>
    %4 = vector.broadcast %2 : vector<1x8xf32> to vector<8x8xf32>
    %5 = arith.addf %3, %4 : vector<8x8xf32>
    %c0_5 = arith.constant 0 : index
    %c0_6 = arith.constant 0 : index
    %6 = vector.load %arg4[%c0_5, %c0_6] : memref<8x8xf32, #tpu.memory_space<vmem>>, vector<8x8xf32>
    tpu.vector_store %arg4[%c0_5, %c0_6], %5 {strides = array<i32>} : memref<8x8xf32, #tpu.memory_space<vmem>>, vector<8x8xf32>,
    return
  }
  func.func @transform_0(%arg0: i32) -> (i32, i32) {
    %c0_i32 = arith.constant 0 : i32
    %c0_i32_0 = arith.constant 0 : i32
    return %arg0, %c0_i32 : i32, i32
  }
  func.func @transform_1(%arg0: i32) -> (i32, i32) {
    %c0_i32 = arith.constant 0 : i32
    %c0_i32_0 = arith.constant 0 : i32
    %c0_i32_1 = arith.constant 0 : i32
    return %c0_i32, %c0_i32_0 : i32, i32
  }
  func.func @transform_2(%arg0: i32) -> (i32, i32) {
    %c0_i32 = arith.constant 0 : i32
    %c0_i32_0 = arith.constant 0 : i32
    %c0_i32_1 = arith.constant 0 : i32
    return %c0_i32, %c0_i32_0 : i32, i32
  }
  func.func @transform_3(%arg0: i32) -> (i32, i32) {
    %c0_i32 = arith.constant 0 : i32
    %c0_i32_0 = arith.constant 0 : i32
    return %arg0, %c0_i32 : i32, i32
  }
}

</mosaic_0001>

<bundles_post_ra>
// kernel: tpu_custom_call.1
= control target key start
LH: loop header
LB: loop body
LE: loop exit
PB: predicated region body
PF: predicated region fallthrough
CT: control target
= control target key end

     0   :  { %s137_s0 = inlined_call_operand.vmem [shape: f32[8,32], index: 0, kind: input, shape index: {}]   ;;  %s138_s1 = inlined_call_operand.vmem [shape: f32[32,8], index: 1, kind: input, shape index: {}]   ;;  %s139_s2 = inlined_call_operand.vmem [shape: f32[1,8], index: 2, kind: input, shape index: {}]   ;;  %s140_s3 = inlined_call_operand.hbm [shape: f32[8,8], index: 3, kind: output, shape index: {}]  }
   0x1   :  { %v19_v0 = vld [vmem:[%s138_s1 + $0x18] sm:$0xff]  ;;  %v18_v1 = vld [vmem:[%s138_s1 + $0x10] sm:$0xff]  ;;  %v17_v2 = vld [vmem:[%s138_s1 + $0x8] sm:$0xff] }
   0x2   :  { %40 = vmatpush.msra.mxu0 %v19_v0 }
   0x3   :  { %8 = vsyncpa [#allocation3], 0  ;;  %v16_v3 = vld [vmem:[%s138_s1] sm:$0xff]  ;;  %vm24_vm0 = vcmask 261120   ;;  %s95_s24 = smov [#allocation2]   ;;  %s57_s28 = sshll.u32 %s140_s3, 4  ;;  %s58_s28 = int_to_ptr.hbm [resolvable:$true] %s57_s28 }
   0x4   :  { %41 = vmatpush.msra.mxu0 %v18_v1  ;;  %v15_v4 = vld [vmem:[%s137_s0] sm:$0xff]  ;;  %s55_s25 = sshll.u32 %s95_s24, 4  ;;  %vm48_vm1 = vcmask 64512   ;;  %s56_s25 = int_to_ptr.vmem [resolvable:$true] %s55_s25 }
   0x5   :  { %v68_v5 = vld [vmem:[%s139_s2] ss:$0 sm:$0xff] }
   0x6   :  { %42 = vmatpush.msra.mxu0 %v17_v2 }
   0x8   :  { %43 = vmatpush.msra.mxu0 %v16_v3 }
   0x9   :  { %66 = vmatmul.msk.f32.vlgmr.msra.gmra.mxu0 %vm24_vm0, %v15_v4 }
  0x86   :  { %v45_v6 = vpop.f32.mrf.mxu0 }
  0x87   :  { %v46_v7 = vadd.f32 %v68_v5, %v45_v6 }
  0x89   :  { %49 = vst.msk [vmem:[#allocation2] sm:$0xff] %vm48_vm1, %v46_v7 }
  0x8a   :  { %60 = dma.vmem_to_hbm [thread:$0]  %s56_s25, 128, %s58_s28, [#allocation3]  }
  0x8b   :  { %93 = dma.done.wait [#allocation3], 128  }
  0x8c   :  { %94 = vsyncadd [#allocation3], 4294967168 }
  0x8d   :  { %65 = vsyncpa [#allocation3], 1 }

</bundles_post_ra>
